<compile_context>
chip_gen: v5e
topology: v5e:2x2
jax: 0.10.0
libtpu: 0.0.40
codegen_flags: <defaults>
</compile_context>

<pallas_src>
import functools

import jax
import jax.numpy as jnp
import numpy as np
from jax import lax
from jax.experimental import pallas as pl
from jax.experimental.pallas import tpu as pltpu


# ---------------------------------------------------------------------------
# Pallas kernel 1: "same"-padded stride-1 conv (NHWC / HWIO) as im2col taps +
# MXU matmul, with fused bias, optional ReLU and optional residual
# (out = residual + res_scale * conv(x)).
# ---------------------------------------------------------------------------
def _conv2d_kernel(*refs, k, h, w, relu, res_scale, has_residual):
    if has_residual:
        x_ref, w_ref, b_ref, r_ref, o_ref = refs
    else:
        x_ref, w_ref, b_ref, o_ref = refs
        r_ref = None
    cin = x_ref.shape[-1]
    ct = o_ref.shape[-1]

    x = x_ref[0].astype(jnp.float32)                       # (Hp, Wp, Cin)
    acc = jnp.zeros((h * w, ct), jnp.float32)
    for di in range(k):                                    # static k*k tap loop
        for dj in range(k):
            patch = x[di:di + h, dj:dj + w, :].reshape(h * w, cin)
            acc = acc + jnp.dot(patch, w_ref[di, dj].astype(jnp.float32),
                                preferred_element_type=jnp.float32)
    acc = acc + b_ref[0, :].astype(jnp.float32)[None, :]
    if relu:
        acc = jnp.maximum(acc, 0.0)
    y = acc.reshape(h, w, ct)
    if has_residual:
        y = r_ref[0].astype(jnp.float32) + res_scale * y
    o_ref[0] = y.astype(o_ref.dtype)


def conv2d_nhwc(x, w, b, *, relu=False, residual=None, res_scale=1.0):
    """F.conv2d(stride=1, padding=k//2) in NHWC, with fused bias/ReLU/residual."""
    B, H, W, Cin = x.shape
    kh, kw, wcin, Cout = w.shape
    assert kh == kw and wcin == Cin
    k, pad = kh, kh // 2
    xp = jnp.pad(x, ((0, 0), (pad, pad), (pad, pad), (0, 0)))
    Hp, Wp = H + 2 * pad, W + 2 * pad

    ct = 128 if Cout % 128 == 0 else Cout          # lane-dense C_out tile
    nct = Cout // ct
    b2 = b.reshape(1, Cout)

    kern = functools.partial(_conv2d_kernel, k=k, h=H, w=W, relu=relu,
                             res_scale=float(res_scale),
                             has_residual=residual is not None)

    in_specs = [
        pl.BlockSpec((1, Hp, Wp, Cin), lambda bi, j: (bi, 0, 0, 0)),
        pl.BlockSpec((k, k, Cin, ct), lambda bi, j: (0, 0, 0, j)),
        pl.BlockSpec((1, ct), lambda bi, j: (0, j)),
    ]
    args = [xp, w, b2]
    if residual is not None:
        in_specs.append(pl.BlockSpec((1, H, W, ct), lambda bi, j: (bi, 0, 0, j)))
        args.append(residual)

    return pl.pallas_call(
        kern,
        out_shape=jax.ShapeDtypeStruct((B, H, W, Cout), x.dtype),
        grid_spec=pltpu.PrefetchScalarGridSpec(
            num_scalar_prefetch=0,
            grid=(B, nct),
            in_specs=in_specs,
            out_specs=pl.BlockSpec((1, H, W, ct), lambda bi, j: (bi, 0, 0, j)),
        ),
        compiler_params=pltpu.CompilerParams(
            dimension_semantics=("parallel", "parallel")),
    )(*args)


# ---------------------------------------------------------------------------
# Pallas kernel 2: MeanShift (a 1x1 diagonal conv) == per-channel affine.
# ---------------------------------------------------------------------------
def _affine_kernel(x_ref, s_ref, t_ref, o_ref):
    o_ref[...] = (x_ref[...] * s_ref[0, :] + t_ref[0, :]).astype(o_ref.dtype)


def mean_shift_nhwc(x, rgb_mean, rgb_std, rgb_range, sign):
    mean = jnp.asarray(rgb_mean, jnp.float32)
    std = jnp.asarray(rgb_std, jnp.float32)
    scale = (1.0 / std).reshape(1, -1)
    shift = (sign * rgb_range * mean / std).reshape(1, -1)
    return pl.pallas_call(
        _affine_kernel,
        out_shape=jax.ShapeDtypeStruct(x.shape, x.dtype),
    )(x, scale, shift)


# ---------------------------------------------------------------------------
# Pallas kernel 3: NLSA bucketed attention core.
# Per (batch * hash round): scores = q @ m^T, logsumexp softmax, ret = p @ y.
# ---------------------------------------------------------------------------
def _nlsa_attn_kernel(q_ref, m_ref, y_ref, ret_ref, lse_ref):
    q = q_ref[0].astype(jnp.float32)            # (nc, cs, Ce)
    m = m_ref[0].astype(jnp.float32)            # (nc, 3cs, Ce)
    y = y_ref[0].astype(jnp.float32)            # (nc, 3cs, Cy)
    s = jnp.einsum("kie,kje->kij", q, m, preferred_element_type=jnp.float32)
    smax = jnp.max(s, axis=-1)
    lse = smax + jnp.log(jnp.sum(jnp.exp(s - smax[..., None]), axis=-1))
    p = jnp.exp(s - lse[..., None])
    ret = jnp.einsum("kij,kje->kie", p, y, preferred_element_type=jnp.float32)
    ret_ref[0] = ret.astype(ret_ref.dtype)
    lse_ref[0] = lse.astype(lse_ref.dtype)


def nlsa_attention_core(q, m, y):
    G, nc, cs, Ce = q.shape
    cs3 = m.shape[2]
    Cy = y.shape[-1]
    return pl.pallas_call(
        _nlsa_attn_kernel,
        out_shape=(jax.ShapeDtypeStruct((G, nc, cs, Cy), jnp.float32),
                   jax.ShapeDtypeStruct((G, nc, cs), jnp.float32)),
        grid_spec=pltpu.PrefetchScalarGridSpec(
            num_scalar_prefetch=0,
            grid=(G,),
            in_specs=[pl.BlockSpec((1, nc, cs, Ce), lambda g: (g, 0, 0, 0)),
                      pl.BlockSpec((1, nc, cs3, Ce), lambda g: (g, 0, 0, 0)),
                      pl.BlockSpec((1, nc, cs3, Cy), lambda g: (g, 0, 0, 0))],
            out_specs=(pl.BlockSpec((1, nc, cs, Cy), lambda g: (g, 0, 0, 0)),
                       pl.BlockSpec((1, nc, cs), lambda g: (g, 0, 0))),
        ),
        compiler_params=pltpu.CompilerParams(dimension_semantics=("parallel",)),
    )(q, m, y)


# ---------------------------------------------------------------------------
# Layout plumbing (pure permutations, done in the wrapper).
# ---------------------------------------------------------------------------
def pixel_unshuffle_nhwc(x, r):
    B, H, W, C = x.shape
    x = x.reshape(B, H // r, r, W // r, r, C)
    x = x.transpose(0, 1, 3, 5, 2, 4)           # (B, H/r, W/r, C, r, r)
    return x.reshape(B, H // r, W // r, C * r * r)


def pixel_shuffle_nhwc(x, r):
    B, H, W, Crr = x.shape
    C = Crr // (r * r)
    x = x.reshape(B, H, W, C, r, r)
    x = x.transpose(0, 1, 4, 2, 5, 3)           # (B, H, r, W, r, C)
    return x.reshape(B, H * r, W * r, C)


# ---------------------------------------------------------------------------
# NonLocalSparseAttention block.
# TODO(synk): LSH argsort / gather / un-sort and the per-hash-round softmax
# combine run as plain JAX ops (no Pallas sort/argsort equivalent); the
# per-forward torch.randn rotations are replaced by an explicit PRNG key.
# ---------------------------------------------------------------------------
def nlsa_block(x, p, key, chunk_size, n_hashes, reduction, res_scale):
    B, H, W, C = x.shape
    Ce = C // reduction
    x_embed = conv2d_nhwc(x, *p["match"])        # 3x3 conv, C -> C/r
    y_embed = conv2d_nhwc(x, *p["assembly"])     # 1x1 conv, C -> C

    L = H * W
    x_embed = x_embed.reshape(B, L, Ce)
    y_embed = y_embed.reshape(B, L, C)
    assert L % chunk_size == 0, "demo assumes chunk_size divides H*W"
    num_chunks = L // chunk_size
    hash_buckets = min(L // chunk_size + (L // chunk_size) % 2, 128)

    # --- LSH hashing -------------------------------------------------------
    rot = jax.random.normal(key, (1, Ce, n_hashes, hash_buckets // 2),
                            x_embed.dtype)
    rot = jnp.broadcast_to(rot, (B, Ce, n_hashes, hash_buckets // 2))
    rotated = jnp.einsum("btf,bfhi->bhti", x_embed, rot)
    rotated = jnp.concatenate([rotated, -rotated], axis=-1)
    hash_codes = jnp.argmax(rotated, axis=-1)                    # (B, nh, L)
    offsets = (jnp.arange(n_hashes) * hash_buckets).reshape(1, n_hashes, 1)
    hash_codes = (hash_codes + offsets).reshape(B, n_hashes * L)

    indices = jnp.argsort(hash_codes, axis=-1, stable=True)
    undo_sort = jnp.argsort(indices, axis=-1, stable=True)
    mod_indices = indices % L
    x_sorted = jnp.take_along_axis(
        x_embed, jnp.broadcast_to(mod_indices[..., None], (B, n_hashes * L, Ce)), axis=1)
    y_sorted = jnp.take_along_axis(
        y_embed, jnp.broadcast_to(mod_indices[..., None], (B, n_hashes * L, C)), axis=1)

    x_att = x_sorted.reshape(B, n_hashes, num_chunks, chunk_size, Ce)
    y_att = y_sorted.reshape(B, n_hashes, num_chunks, chunk_size, C)

    norm = jnp.sqrt(jnp.sum(x_att * x_att, axis=-1, keepdims=True))
    x_match = x_att / jnp.maximum(norm, 5e-5)

    def add_adjacent(t):   # attend to the previous / next bucket as well
        return jnp.concatenate(
            [t, jnp.roll(t, 1, axis=2), jnp.roll(t, -1, axis=2)], axis=3)

    x_match = add_adjacent(x_match)
    y_ext = add_adjacent(y_att)

    G = B * n_hashes
    ret, lse = nlsa_attention_core(
        x_att.reshape(G, num_chunks, chunk_size, Ce),
        x_match.reshape(G, num_chunks, 3 * chunk_size, Ce),
        y_ext.reshape(G, num_chunks, 3 * chunk_size, C))

    ret = ret.reshape(B, n_hashes * L, C)
    lse = lse.reshape(B, n_hashes * L)
    ret = jnp.take_along_axis(
        ret, jnp.broadcast_to(undo_sort[..., None], (B, n_hashes * L, C)), axis=1)
    lse = jnp.take_along_axis(lse, undo_sort, axis=1)

    ret = ret.reshape(B, n_hashes, L, C)
    probs = jax.nn.softmax(lse.reshape(B, n_hashes, L, 1), axis=1)
    out = jnp.sum(ret * probs, axis=1).reshape(B, H, W, C)
    return x + res_scale * out


def res_block(x, p, res_scale):
    h = conv2d_nhwc(x, *p["conv1"], relu=True)
    return conv2d_nhwc(h, *p["conv2"], residual=x, res_scale=res_scale)


# ---------------------------------------------------------------------------
# NLSN forward.
# ---------------------------------------------------------------------------
def nlsn_forward(params, x_nchw, key, *, scale, res_scale, chunk_size, n_hashes,
                 reduction, rgb_range, rgb_mean, rgb_std):
    x = jnp.transpose(x_nchw, (0, 2, 3, 1))                      # NCHW -> NHWC
    x = mean_shift_nhwc(x, rgb_mean, rgb_std, rgb_range, -1.0)   # sub_mean
    x = pixel_unshuffle_nhwc(x, scale)                           # space2depth
    x = conv2d_nhwc(x, *params["head"])                          # head

    nlsa_keys = jax.random.split(key, len(params["nlsa"]))
    res = nlsa_block(x, params["nlsa"][0], nlsa_keys[0], chunk_size, n_hashes,
                     reduction, res_scale)
    ai = 1
    for i, rb in enumerate(params["resblocks"]):
        res = res_block(res, rb, res_scale)
        if (i + 1) % 8 == 0:
            res = nlsa_block(res, params["nlsa"][ai], nlsa_keys[ai], chunk_size,
                             n_hashes, reduction, res_scale)
            ai += 1
    # body-tail conv fused with the global skip connection (res += x)
    res = conv2d_nhwc(res, *params["body_tail"], residual=x, res_scale=1.0)

    # tail: Upsampler(scale) = [conv(nf, 4nf, 3) + PixelShuffle(2)] * log2(scale)
    t = res
    for up in params["upsample"]:
        t = conv2d_nhwc(t, *up)
        t = pixel_shuffle_nhwc(t, 2)
    t = conv2d_nhwc(t, *params["tail"])                          # nf -> 3
    t = mean_shift_nhwc(t, rgb_mean, rgb_std, rgb_range, +1.0)   # add_mean
    return jnp.transpose(t, (0, 3, 1, 2))                        # NHWC -> NCHW


def init_nlsn_params(key, *, n_feats, n_resblock, scale, reduction, kernel_size=3):
    assert scale & (scale - 1) == 0, "scale must be a power of two"
    n_nlsa = 1 + n_resblock // 8
    n_up = int(round(np.log2(scale)))
    n_conv = 3 + 2 * n_nlsa + 2 * n_resblock + n_up
    kit = iter(jax.random.split(key, n_conv + 2))

    def conv_p(k, cin, cout):
        kw_, kb_ = jax.random.split(next(kit))
        std = 1.0 / np.sqrt(k * k * cin)
        w = jax.random.normal(kw_, (k, k, cin, cout), jnp.float32) * std
        b = jax.random.uniform(kb_, (cout,), jnp.float32, -std, std)
        return (w, b)

    return {
        "head": conv_p(kernel_size, 3 * scale * scale, n_feats),
        "nlsa": [{"match": conv_p(kernel_size, n_feats, n_feats // reduction),
                  "assembly": conv_p(1, n_feats, n_feats)} for _ in range(n_nlsa)],
        "resblocks": [{"conv1": conv_p(kernel_size, n_feats, n_feats),
                       "conv2": conv_p(kernel_size, n_feats, n_feats)}
                      for _ in range(n_resblock)],
        "body_tail": conv_p(kernel_size, n_feats, n_feats),
        "upsample": [conv_p(kernel_size, n_feats, 4 * n_feats) for _ in range(n_up)],
        "tail": conv_p(kernel_size, n_feats, 3),
    }


if __name__ == "__main__":
    # Scaled-down NLSN hyper-parameters for a fast small-shape demo (module
    # defaults: n_resblock=32, n_feats=256, chunk_size=144, n_hashes=4);
    # the forward structure is identical.
    scale = 4
    n_feats = 128
    n_resblock = 2
    reduction = 4
    n_hashes = 2
    chunk_size = 8           # must divide (H/scale)*(W/scale) = 16
    res_scale = 0.1
    rgb_range = 1.0
    rgb_mean = (0.4488, 0.4371, 0.404)
    rgb_std = (1.0, 1.0, 1.0)

    B, H, W = 2, 16, 16

    root = jax.random.PRNGKey(0)
    k_params, k_x, k_lsh, k_chk = jax.random.split(root, 4)
    params = init_nlsn_params(k_params, n_feats=n_feats, n_resblock=n_resblock,
                              scale=scale, reduction=reduction)
    x = jax.random.uniform(k_x, (B, 3, H, W), dtype=jnp.float32)

    # --- unit check 1: Pallas conv kernel vs lax.conv (head-conv shapes) -----
    w_h, b_h = params["head"]
    xt = jax.random.normal(k_chk, (B, H // scale, W // scale, 3 * scale * scale),
                           jnp.float32)
    y_pal = jax.block_until_ready(conv2d_nhwc(xt, w_h, b_h))
    y_ref = lax.conv_general_dilated(
        xt, w_h, (1, 1), "SAME", dimension_numbers=("NHWC", "HWIO", "NHWC"),
        precision=lax.Precision.HIGHEST) + b_h.reshape(1, 1, 1, -1)
    np.testing.assert_allclose(np.asarray(y_pal), np.asarray(y_ref),
                               rtol=5e-2, atol=3e-2)

    # --- unit check 2: Pallas bucketed-attention core vs jnp reference -------
    kq, km, ky = jax.random.split(jax.random.PRNGKey(7), 3)
    G, nc, cs, Ce = 4, 2, chunk_size, n_feats // reduction
    q = jax.random.normal(kq, (G, nc, cs, Ce), jnp.float32)
    m = jax.random.normal(km, (G, nc, 3 * cs, Ce), jnp.float32) * 0.1
    yv = jax.random.normal(ky, (G, nc, 3 * cs, n_feats), jnp.float32)
    ret_p, lse_p = jax.block_until_ready(nlsa_attention_core(q, m, yv))
    s = jnp.einsum("gkie,gkje->gkij", q, m)
    lse_r = jax.scipy.special.logsumexp(s, axis=-1)
    ret_r = jnp.einsum("gkij,gkje->gkie", jnp.exp(s - lse_r[..., None]), yv)
    np.testing.assert_allclose(np.asarray(ret_p), np.asarray(ret_r),
                               rtol=5e-2, atol=3e-2)
    np.testing.assert_allclose(np.asarray(lse_p), np.asarray(lse_r),
                               rtol=5e-2, atol=3e-2)

    # --- full NLSN forward ----------------------------------------------------
    fwd = jax.jit(lambda p, xi, k: nlsn_forward(
        p, xi, k, scale=scale, res_scale=res_scale, chunk_size=chunk_size,
        n_hashes=n_hashes, reduction=reduction, rgb_range=rgb_range,
        rgb_mean=rgb_mean, rgb_std=rgb_std))
    out = jax.block_until_ready(fwd(params, x, k_lsh))

    assert out.shape == (B, 3, H, W), out.shape
    assert np.isfinite(np.asarray(out)).all()
    print("KERNEL_OK")
</pallas_src>

<mosaic_0001>
module attributes {stable_mosaic.version = 11 : i64} {
  func.func @_conv2d_kernel(%arg0: i32, %arg1: i32, %arg2: memref<1x6x6x48xf32, #tpu.memory_space<vmem>>, %arg3: memref<3x3x48x128xf32, #tpu.memory_space<vmem>>, %arg4: memref<1x128xf32, #tpu.memory_space<vmem>>, %arg5: memref<1x4x4x128xf32, #tpu.memory_space<vmem>>) attributes {dimension_semantics = [#tpu.dimension_semantics<parallel>, #tpu.dimension_semantics<parallel>], iteration_bounds = array<i64: 2, 1>, scalar_prefetch = 0 : i64, scratch_operands = 0 : i64, tpu.core_type = #tpu.core_type<tc>, window_params = [{transform_indices = @transform_0, window_bounds = array<i64: 1, 6, 6, 48>}, {transform_indices = @transform_1, window_bounds = array<i64: 3, 3, 48, 128>}, {transform_indices = @transform_2, window_bounds = array<i64: 1, 128>}, {transform_indices = @transform_3, window_bounds = array<i64: 1, 4, 4, 128>}]} {
    %c0 = arith.constant 0 : index
    %c0_0 = arith.constant 0 : index
    %c0_1 = arith.constant 0 : index
    %c0_2 = arith.constant 0 : index
    %0 = vector.load %arg2[%c0, %c0_0, %c0_1, %c0_2] : memref<1x6x6x48xf32, #tpu.memory_space<vmem>>, vector<1x6x6x48xf32>
    %1 = vector.shape_cast %0 : vector<1x6x6x48xf32> to vector<6x6x48xf32>
    %cst = arith.constant 0.000000e+00 : f32
    %2 = vector.broadcast %cst : f32 to vector<16x128xf32>
    %3 = vector.extract_strided_slice %1 {offsets = [0, 0, 0], sizes = [4, 4, 48], strides = [1, 1, 1]} : vector<6x6x48xf32> to vector<4x4x48xf32>
    %4 = vector.shape_cast %3 : vector<4x4x48xf32> to vector<16x48xf32>
    %c0_3 = arith.constant 0 : index
    %c0_4 = arith.constant 0 : index
    %c0_5 = arith.constant 0 : index
    %c0_6 = arith.constant 0 : index
    %5 = vector.load %arg3[%c0_3, %c0_4, %c0_5, %c0_6] : memref<3x3x48x128xf32, #tpu.memory_space<vmem>>, vector<1x1x48x128xf32>
    %6 = vector.shape_cast %5 : vector<1x1x48x128xf32> to vector<48x128xf32>
    %cst_7 = arith.constant dense<0.000000e+00> : vector<16x128xf32>
    %7 = tpu.matmul %4, %6, %cst_7 {dimension_numbers = #tpu.dot_dimension_numbers<[1], [0], [0], [1], [0, 0, 1, 1], [], []>} : vector<16x48xf32>, vector<48x128xf32>, vector<16x128xf32> -> vector<16x128xf32>
    %8 = arith.addf %2, %7 : vector<16x128xf32>
    %9 = vector.extract_strided_slice %1 {offsets = [0, 1, 0], sizes = [4, 4, 48], strides = [1, 1, 1]} : vector<6x6x48xf32> to vector<4x4x48xf32>
    %10 = vector.shape_cast %9 : vector<4x4x48xf32> to vector<16x48xf32>
    %c0_8 = arith.constant 0 : index
    %c1 = arith.constant 1 : index
    %c0_9 = arith.constant 0 : index
    %c0_10 = arith.constant 0 : index
    %11 = vector.load %arg3[%c0_8, %c1, %c0_9, %c0_10] : memref<3x3x48x128xf32, #tpu.memory_space<vmem>>, vector<1x1x48x128xf32>
    %12 = vector.shape_cast %11 : vector<1x1x48x128xf32> to vector<48x128xf32>
    %cst_11 = arith.constant dense<0.000000e+00> : vector<16x128xf32>
    %13 = tpu.matmul %10, %12, %cst_11 {dimension_numbers = #tpu.dot_dimension_numbers<[1], [0], [0], [1], [0, 0, 1, 1], [], []>} : vector<16x48xf32>, vector<48x128xf32>, vector<16x128xf32> -> vector<16x128xf32>
    %14 = arith.addf %8, %13 : vector<16x128xf32>
    %15 = vector.extract_strided_slice %1 {offsets = [0, 2, 0], sizes = [4, 4, 48], strides = [1, 1, 1]} : vector<6x6x48xf32> to vector<4x4x48xf32>
    %16 = vector.shape_cast %15 : vector<4x4x48xf32> to vector<16x48xf32>
    %c0_12 = arith.constant 0 : index
    %c2 = arith.constant 2 : index
    %c0_13 = arith.constant 0 : index
    %c0_14 = arith.constant 0 : index
    %17 = vector.load %arg3[%c0_12, %c2, %c0_13, %c0_14] : memref<3x3x48x128xf32, #tpu.memory_space<vmem>>, vector<1x1x48x128xf32>
    %18 = vector.shape_cast %17 : vector<1x1x48x128xf32> to vector<48x128xf32>
    %cst_15 = arith.constant dense<0.000000e+00> : vector<16x128xf32>
    %19 = tpu.matmul %16, %18, %cst_15 {dimension_numbers = #tpu.dot_dimension_numbers<[1], [0], [0], [1], [0, 0, 1, 1], [], []>} : vector<16x48xf32>, vector<48x128xf32>, vector<16x128xf32> -> vector<16x128xf32>
    %20 = arith.addf %14, %19 : vector<16x128xf32>
    %21 = vector.extract_strided_slice %1 {offsets = [1, 0, 0], sizes = [4, 4, 48], strides = [1, 1, 1]} : vector<6x6x48xf32> to vector<4x4x48xf32>
    %22 = vector.shape_cast %21 : vector<4x4x48xf32> to vector<16x48xf32>
    %c1_16 = arith.constant 1 : index
    %c0_17 = arith.constant 0 : index
    %c0_18 = arith.constant 0 : index
    %c0_19 = arith.constant 0 : index
    %23 = vector.load %arg3[%c1_16, %c0_17, %c0_18, %c0_19] : memref<3x3x48x128xf32, #tpu.memory_space<vmem>>, vector<1x1x48x128xf32>
    %24 = vector.shape_cast %23 : vector<1x1x48x128xf32> to vector<48x128xf32>
    %cst_20 = arith.constant dense<0.000000e+00> : vector<16x128xf32>
    %25 = tpu.matmul %22, %24, %cst_20 {dimension_numbers = #tpu.dot_dimension_numbers<[1], [0], [0], [1], [0, 0, 1, 1], [], []>} : vector<16x48xf32>, vector<48x128xf32>, vector<16x128xf32> -> vector<16x128xf32>
    %26 = arith.addf %20, %25 : vector<16x128xf32>
    %27 = vector.extract_strided_slice %1 {offsets = [1, 1, 0], sizes = [4, 4, 48], strides = [1, 1, 1]} : vector<6x6x48xf32> to vector<4x4x48xf32>
    %28 = vector.shape_cast %27 : vector<4x4x48xf32> to vector<16x48xf32>
    %c1_21 = arith.constant 1 : index
    %c1_22 = arith.constant 1 : index
    %c0_23 = arith.constant 0 : index
    %c0_24 = arith.constant 0 : index
    %29 = vector.load %arg3[%c1_21, %c1_22, %c0_23, %c0_24] : memref<3x3x48x128xf32, #tpu.memory_space<vmem>>, vector<1x1x48x128xf32>
    %30 = vector.shape_cast %29 : vector<1x1x48x128xf32> to vector<48x128xf32>
    %cst_25 = arith.constant dense<0.000000e+00> : vector<16x128xf32>
    %31 = tpu.matmul %28, %30, %cst_25 {dimension_numbers = #tpu.dot_dimension_numbers<[1], [0], [0], [1], [0, 0, 1, 1], [], []>} : vector<16x48xf32>, vector<48x128xf32>, vector<16x128xf32> -> vector<16x128xf32>
    %32 = arith.addf %26, %31 : vector<16x128xf32>
    %33 = vector.extract_strided_slice %1 {offsets = [1, 2, 0], sizes = [4, 4, 48], strides = [1, 1, 1]} : vector<6x6x48xf32> to vector<4x4x48xf32>
    %34 = vector.shape_cast %33 : vector<4x4x48xf32> to vector<16x48xf32>
    %c1_26 = arith.constant 1 : index
    %c2_27 = arith.constant 2 : index
    %c0_28 = arith.constant 0 : index
    %c0_29 = arith.constant 0 : index
    %35 = vector.load %arg3[%c1_26, %c2_27, %c0_28, %c0_29] : memref<3x3x48x128xf32, #tpu.memory_space<vmem>>, vector<1x1x48x128xf32>
    %36 = vector.shape_cast %35 : vector<1x1x48x128xf32> to vector<48x128xf32>
    %cst_30 = arith.constant dense<0.000000e+00> : vector<16x128xf32>
    %37 = tpu.matmul %34, %36, %cst_30 {dimension_numbers = #tpu.dot_dimension_numbers<[1], [0], [0], [1], [0, 0, 1, 1], [], []>} : vector<16x48xf32>, vector<48x128xf32>, vector<16x128xf32> -> vector<16x128xf32>
    %38 = arith.addf %32, %37 : vector<16x128xf32>
    %39 = vector.extract_strided_slice %1 {offsets = [2, 0, 0], sizes = [4, 4, 48], strides = [1, 1, 1]} : vector<6x6x48xf32> to vector<4x4x48xf32>
    %40 = vector.shape_cast %39 : vector<4x4x48xf32> to vector<16x48xf32>
    %c2_31 = arith.constant 2 : index
    %c0_32 = arith.constant 0 : index
    %c0_33 = arith.constant 0 : index
    %c0_34 = arith.constant 0 : index
    %41 = vector.load %arg3[%c2_31, %c0_32, %c0_33, %c0_34] : memref<3x3x48x128xf32, #tpu.memory_space<vmem>>, vector<1x1x48x128xf32>
    %42 = vector.shape_cast %41 : vector<1x1x48x128xf32> to vector<48x128xf32>
    %cst_35 = arith.constant dense<0.000000e+00> : vector<16x128xf32>
    %43 = tpu.matmul %40, %42, %cst_35 {dimension_numbers = #tpu.dot_dimension_numbers<[1], [0], [0], [1], [0, 0, 1, 1], [], []>} : vector<16x48xf32>, vector<48x128xf32>, vector<16x128xf32> -> vector<16x128xf32>
    %44 = arith.addf %38, %43 : vector<16x128xf32>
    %45 = vector.extract_strided_slice %1 {offsets = [2, 1, 0], sizes = [4, 4, 48], strides = [1, 1, 1]} : vector<6x6x48xf32> to vector<4x4x48xf32>
    %46 = vector.shape_cast %45 : vector<4x4x48xf32> to vector<16x48xf32>
    %c2_36 = arith.constant 2 : index
    %c1_37 = arith.constant 1 : index
    %c0_38 = arith.constant 0 : index
    %c0_39 = arith.constant 0 : index
    %47 = vector.load %arg3[%c2_36, %c1_37, %c0_38, %c0_39] : memref<3x3x48x128xf32, #tpu.memory_space<vmem>>, vector<1x1x48x128xf32>
    %48 = vector.shape_cast %47 : vector<1x1x48x128xf32> to vector<48x128xf32>
    %cst_40 = arith.constant dense<0.000000e+00> : vector<16x128xf32>
    %49 = tpu.matmul %46, %48, %cst_40 {dimension_numbers = #tpu.dot_dimension_numbers<[1], [0], [0], [1], [0, 0, 1, 1], [], []>} : vector<16x48xf32>, vector<48x128xf32>, vector<16x128xf32> -> vector<16x128xf32>
    %50 = arith.addf %44, %49 : vector<16x128xf32>
    %51 = vector.extract_strided_slice %1 {offsets = [2, 2, 0], sizes = [4, 4, 48], strides = [1, 1, 1]} : vector<6x6x48xf32> to vector<4x4x48xf32>
    %52 = vector.shape_cast %51 : vector<4x4x48xf32> to vector<16x48xf32>
    %c2_41 = arith.constant 2 : index
    %c2_42 = arith.constant 2 : index
    %c0_43 = arith.constant 0 : index
    %c0_44 = arith.constant 0 : index
    %53 = vector.load %arg3[%c2_41, %c2_42, %c0_43, %c0_44] : memref<3x3x48x128xf32, #tpu.memory_space<vmem>>, vector<1x1x48x128xf32>
    %54 = vector.shape_cast %53 : vector<1x1x48x128xf32> to vector<48x128xf32>
    %cst_45 = arith.constant dense<0.000000e+00> : vector<16x128xf32>
    %55 = tpu.matmul %52, %54, %cst_45 {dimension_numbers = #tpu.dot_dimension_numbers<[1], [0], [0], [1], [0, 0, 1, 1], [], []>} : vector<16x48xf32>, vector<48x128xf32>, vector<16x128xf32> -> vector<16x128xf32>
    %56 = arith.addf %50, %55 : vector<16x128xf32>
    %c0_46 = arith.constant 0 : index
    %c0_47 = arith.constant 0 : index
    %57 = vector.load %arg4[%c0_46, %c0_47] : memref<1x128xf32, #tpu.memory_space<vmem>>, vector<1x128xf32>
    %58 = vector.shape_cast %57 : vector<1x128xf32> to vector<128xf32>
    %59 = vector.shape_cast %58 : vector<128xf32> to vector<1x128xf32>
    %60 = vector.broadcast %59 : vector<1x128xf32> to vector<16x128xf32>
    %61 = arith.addf %56, %60 : vector<16x128xf32>
    %62 = vector.shape_cast %61 : vector<16x128xf32> to vector<4x4x128xf32>
    %c0_48 = arith.constant 0 : index
    %c0_49 = arith.constant 0 : index
    %c0_50 = arith.constant 0 : index
    %c0_51 = arith.constant 0 : index
    %63 = vector.load %arg5[%c0_48, %c0_49, %c0_50, %c0_51] : memref<1x4x4x128xf32, #tpu.memory_space<vmem>>, vector<1x4x4x128xf32>
    %64 = vector.shape_cast %63 : vector<1x4x4x128xf32> to vector<4x4x128xf32>
    %65 = vector.shape_cast %62 : vector<4x4x128xf32> to vector<1x4x4x128xf32>
    tpu.vector_store %arg5[%c0_48, %c0_49, %c0_50, %c0_51], %65 {strides = array<i32>} : memref<1x4x4x128xf32, #tpu.memory_space<vmem>>, vector<1x4x4x128xf32>,
    return
  }
  func.func @transform_0(%arg0: i32, %arg1: i32) -> (i32, i32, i32, i32) {
    %c0_i32 = arith.constant 0 : i32
    %c0_i32_0 = arith.constant 0 : i32
    %c0_i32_1 = arith.constant 0 : i32
    %c0_i32_2 = arith.constant 0 : i32
    return %arg0, %c0_i32, %c0_i32_0, %c0_i32_1 : i32, i32, i32, i32
  }
  func.func @transform_1(%arg0: i32, %arg1: i32) -> (i32, i32, i32, i32) {
    %c0_i32 = arith.constant 0 : i32
    %c0_i32_0 = arith.constant 0 : i32
    %c0_i32_1 = arith.constant 0 : i32
    %c0_i32_2 = arith.constant 0 : i32
    return %c0_i32, %c0_i32_0, %c0_i32_1, %arg1 : i32, i32, i32, i32
  }
  func.func @transform_2(%arg0: i32, %arg1: i32) -> (i32, i32) {
    %c0_i32 = arith.constant 0 : i32
    %c0_i32_0 = arith.constant 0 : i32
    return %c0_i32, %arg1 : i32, i32
  }
  func.func @transform_3(%arg0: i32, %arg1: i32) -> (i32, i32, i32, i32) {
    %c0_i32 = arith.constant 0 : i32
    %c0_i32_0 = arith.constant 0 : i32
    %c0_i32_1 = arith.constant 0 : i32
    return %arg0, %c0_i32, %c0_i32_0, %arg1 : i32, i32, i32, i32
  }
}

</mosaic_0001>

<bundles_post_ra>
// kernel: tpu_custom_call.1
= control target key start
LH: loop header
LB: loop body
LE: loop exit
PB: predicated region body
PF: predicated region fallthrough
CT: control target
= control target key end

     0   :  { %8 = vsyncpa [#allocation3], 0  ;;  %s1338_s0 = inlined_call_operand.vmem [shape: f32[2,6,6,48], index: 0, kind: input, shape index: {}]   ;;  %s1339_s1 = inlined_call_operand.hbm [shape: f32[3,3,48,128], index: 1, kind: input, shape index: {}]   ;;  %s1340_s2 = inlined_call_operand.vmem [shape: f32[1,128], index: 2, kind: input, shape index: {}]   ;;  %s1341_s3 = inlined_call_operand.hbm [shape: f32[2,4,4,128], index: 3, kind: output, shape index: {}]  }
   0x1   :  { %9 = vsyncpa [#allocation4], 0 }
   0x2   :  { %11 = vsyncpa [#allocation4 + $0x1], 0  ;;  %s1088_s12 = smov 0   ;;  %s1090_s13 = smov 0  }
   0x3   :  { %s1092_s14 = smov 0   ;;  %s1094_s15 = smov 0  }
   0x4   :  { %s1096_s16 = smov 0   ;;  %s1098_s17 = smov 0  }
   0x5 LB: > { %s825_s18 = sadd.s32 4294967295, %s1061_s17   ;;  %s826_s19 = sadd.s32 4294967294, %s1061_s17   ;;  %s1061_s17 = sphi %s1098_s17, %s17_s17   ;;  %s1057_s16 = sphi %s1096_s16, %s1352_s16   ;;  %s1053_s15 = sphi %s1094_s15, %s1351_s15   ;;  %s1049_s14 = sphi %s1092_s14, %s1350_s14   ;;  %s1045_s13 = sphi %s1090_s13, %s1349_s13   ;;  %s1041_s12 = sphi %s1088_s12, %s1348_s12  }
   0x6   : > { %s29_s20 = sadd.s32 1, %s1057_s16  ;;  %s116_s21 = sadd.s32 1, %s1049_s14 }
   0x7   : > { %p31_p0 = scmp.ge.s32.totalorder %s29_s20, 2  ;;  %p126_p1 = scmp.ne.s32.totalorder %s1049_s14, %s1045_s13 }
   0x8   : > { %p127_p2 = scmp.eq.s32.totalorder %s825_s18, 1  ;;  %p132_p3 = scmp.ne.s32.totalorder %s1045_s13, %s1041_s12 }
   0x9   : > { %s1354_s20 = smov (%p31_p0, %s29_s20), 0  ;;  %p133_p5 = scmp.eq.s32.totalorder %s826_s19, 1 }
   0xa   : > { %p1128_p4 = por %p127_p2, %p126_p1  ;;  %s111_s23 = ssub.s32 %s1057_s16, %s1354_s20 }
   0xb   : > { %p827_p6 = scmp.ge.s32.totalorder %s1061_s17, 1  ;;  %p114_p7 = scmp.eq.s32.totalorder %s111_s23, 0 }
   0xc   : > { %p1135_p8 = por %p133_p5, %p132_p3  ;;  %p140_p9 = scmp.lt.s32.totalorder %s1061_s17, 3 }
   0xd   : > { %s1141_s25 = scalar_select %p114_p7, %s1049_s14, %s116_s21  }
   0xe   : > { %p141_p10 = pnand %p827_p6, %p140_p9  ;;  %p892_p11 = scmp.eq.s32.totalorder %s825_s18, 0 }
   0xf   : > { %s153_s28 = sshll.u32 %s1339_s1, 4  ;;  %s1063_s29 = smov [#allocation2]   ;;  %s154_s28 = int_to_ptr.hbm [resolvable:$true] %s153_s28 }
  0x10   : > { %p884_p12 = pneg %p141_p10  ;;  %s155_s30 = sshll.u32 %s1063_s29, 4  ;;  %s156_s30 = int_to_ptr.vmem [resolvable:$true] %s155_s30 }
  0x11   : > { %s1064_s4 = smov 128   ;;  %s1065_s5 = smov 8  }
  0x12   : > { %p885_p13 = pnand %p892_p11, %p884_p12  ;;  %185 = sbr.rel (%p141_p10) target bundleno = 261 (0x105), region = 32 }
  0x14   : > { %887 = dma.hbm_to_vmem [thread:$0]  (!%p885_p13), %s154_s28, 6912, %s156_s30, [#allocation3], %s1064_s4, %s1064_s4, %s1065_s5  }
  0x17   : > { %1032 = dma.done.wait (%p892_p11), [#allocation3], 6912  }
  0x18   : > { %1034 = vsyncadd (%p892_p11), [#allocation3], 4294960384  ;;  %p213_p0 = scmp.lt.s32.totalorder %s1053_s15, 1  ;;  %v266_v0 = vld [vmem:[#allocation2 + $0x58] sm:$0xff]  ;;  %v265_v1 = vld [vmem:[#allocation2 + $0x50] sm:$0xff]  ;;  %vm241_vm0 = vcmask 1042432  }
  0x19   : > { %v232_v2 = vld [vmem:[#allocation2 + $0x28] sm:$0xff]  ;;  %291 = vmatpush.msra.mxu0 %v266_v0  ;;  %v231_v4 = vld [vmem:[#allocation2 + $0x20] sm:$0xff]  ;;  %v230_v7 = vld [vmem:[#allocation2 + $0x18] sm:$0xff]  ;;  %vm242_vm1 = vcmask 1046532   ;;  %vm276_vm3 = vcmask 392192   ;;  %vm340_vm4 = vcmask 1041408  }
  0x1a   : > { %s214_s6 = scalar_select %p213_p0, %s1053_s15, 1  ;;  %327 = vmatpush.msra.mxu1 %v232_v2  ;;  %v365_v3 = vld [vmem:[#allocation2 + $0x88] sm:$0xff]  ;;  %v364_v6 = vld [vmem:[#allocation2 + $0x80] sm:$0xff]  ;;  %v363_v8 = vld [vmem:[#allocation2 + $0x78] sm:$0xff]  ;;  %vm341_vm5 = vcmask 1045508  }
  0x1b   : > { %389 = vmatpush.msra.mxu2 %v365_v3  ;;  %v264_v5 = vld [vmem:[#allocation2 + $0x48] sm:$0xff]  ;;  %292 = vmatpush.msra.mxu0 %v265_v1  ;;  %v263_v9 = vld [vmem:[#allocation2 + $0x40] sm:$0xff]  ;;  %v229_v10 = vld [vmem:[#allocation2 + $0x10] sm:$0xff]  ;;  %s210_s11 = sand.u32 1, %s1045_s13   ;;  %s870_s23 = sshll.u32 %s1053_s15, 4 }
  0x1c   : > { %s877_s7 = smul.u32 48, %s214_s6  ;;  %328 = vmatpush.msra.mxu1 %v231_v4  ;;  %v410_v11 = vld [vmem:[#allocation2 + $0xb8] sm:$0xff]  ;;  %v362_v13 = vld [vmem:[#allocation2 + $0x70] sm:$0xff]  ;;  %v228_v15 = vld [vmem:[#allocation2 + $0x8] sm:$0xff]  ;;  %s833_s18 = sshll.u32 %s210_s11, 4 }
  0x1d   : > { %390 = vmatpush.msra.mxu2 %v364_v6  ;;  %293 = vmatpush.msra.mxu0 %v264_v5  ;;  %v262_v12 = vld [vmem:[#allocation2 + $0x38] sm:$0xff]  ;;  %v409_v14 = vld [vmem:[#allocation2 + $0xb0] sm:$0xff]  ;;  %v361_v18 = vld [vmem:[#allocation2 + $0x68] sm:$0xff]  ;;  %s212_s26 = scalar_lea.vmem [#allocation5], %s833_s18  ;;  %s723_s29 = scalar_lea.hbm %s1341_s3, %s870_s23 }
  0x1e   : > { %s1151_s10 = scalar_lea.vmem %s1338_s0, %s877_s7  ;;  %329 = vmatpush.msra.mxu1 %v230_v7  ;;  %435 = vmatpush.msra.mxu3 %v410_v11  ;;  %v408_v23 = vld [vmem:[#allocation2 + $0xa8] sm:$0xff]  ;;  %v261_v24 = vld [vmem:[#allocation2 + $0x30] sm:$0xff]  ;;  %vm1165_vm2 = vmor %vm241_vm0, %vm242_vm1  ;;  %s724_s30 = sshll.u32 %s212_s26, 4  ;;  %s725_s30 = int_to_ptr.vmem [resolvable:$true] %s724_s30 }
  0x1f   : > { %391 = vmatpush.msra.mxu2 %v363_v8  ;;  %v1154_v16 = vld [vmem:[%s1151_s10] sm:$0x3f]  ;;  %v1157_v17 = vld [vmem:[%s1151_s10 + $0x8] sm:$0x3f]  ;;  %294 = vmatpush.msra.mxu0 %v263_v9  ;;  %v461_v32 = vld [vmem:[#allocation2 + $0xe8] sm:$0xff]  ;;  %s726_s4 = sshll.u32 %s723_s29, 4  ;;  %s727_s4 = int_to_ptr.hbm [resolvable:$true] %s726_s4 }
  0x20   : > { %330 = vmatpush.msra.mxu1 %v229_v10  ;;  %v237_v19 = vrot.slane %v1154_v16, 4  ;;  %v238_v20 = vrot.slane %v1157_v17, 4  ;;  %v835_v21 = vrot.slane %v1154_v16, 9  ;;  %v836_v22 = vrot.slane %v1157_v17, 9  ;;  %436 = vmatpush.msra.mxu3 %v409_v14  ;;  %v227_v26 = vld [vmem:[#allocation2] sm:$0xff]  ;;  %v406_v31 = vld [vmem:[#allocation2 + $0x98] sm:$0xff]  ;;  %vm1210_vm6 = vmor %vm340_vm4, %vm341_vm5 }
  0x21   : > { %392 = vmatpush.msra.mxu2 %v362_v13  ;;  %295 = vmatpush.msra.mxu0 %v262_v12  ;;  %v360_v29 = vld [vmem:[#allocation2 + $0x60] sm:$0xff]  ;;  %v510_v33 = vld [vmem:[#allocation2 + $0x118] sm:$0xff]  ;;  %v1174_v34 = vld [vmem:[%s1151_s10 + $0x10] sm:$0x3f]  ;;  %v843_v0 = vrot.slane %v1154_v16, 10  ;;  %v844_v3 = vrot.slane %v1157_v17, 10 }
  0x22   : > { %331 = vmatpush.msra.mxu1 %v228_v15  ;;  %v246_v27 = vrot.slane %v237_v19, 5  ;;  %v250_v28 = vrot.slane %v238_v20, 5  ;;  %v407_v30 = vld [vmem:[#allocation2 + $0xa0] sm:$0xff]  ;;  %437 = vmatpush.msra.mxu3 %v408_v23  ;;  %v555_v37 = vld [vmem:[#allocation2 + $0x148] sm:$0xff]  ;;  %v1183_v38 = vld [vmem:[%s1151_s10 + $0x18] sm:$0x3f] }
  0x23   : > { %393 = vmatpush.msra.mxu2 %v361_v18  ;;  %296 = vmatpush.msra.mxu0 %v261_v24  ;;  %v239_v39 = vrot.slane %v1174_v34, 4  ;;  %v460_v40 = vld [vmem:[#allocation2 + $0xe0] sm:$0xff]  ;;  %v240_v41 = vrot.slane %v1183_v38, 4  ;;  %v837_v42 = vrot.slane %v1174_v34, 9  ;;  %v838_v43 = vrot.slane %v1183_v38, 9  ;;  %v405_v44 = vld [vmem:[#allocation2 + $0x90] sm:$0xff] }
  0x24   : > { %v247_v35 = vsel %vm1165_vm2, %v835_v21, %v246_v27  ;;  %v1180_v36 = vsel %vm1165_vm2, %v836_v22, %v250_v28  ;;  %332 = vmatpush.msra.mxu1 %v227_v26  ;;  %438 = vmatpush.msra.mxu3 %v407_v30  ;;  %v459_v49 = vld [vmem:[#allocation2 + $0xd8] sm:$0xff]  ;;  %v509_v50 = vld [vmem:[#allocation2 + $0x110] sm:$0xff]  ;;  %v554_v51 = vld [vmem:[#allocation2 + $0x140] sm:$0xff]  ;;  %v345_v1 = vrot.slane %v237_v19, 6  ;;  %v349_v4 = vrot.slane %v238_v20, 6  ;;  %s711_s15 = scalar_lea.sflag [#allocation4], %s210_s11 }
  0x25   : > { %267 = vst [vmem:[#allocation1] ss:$2 sm:$0xff] %v247_v35  ;;  %394 = vmatpush.msra.mxu2 %v360_v29  ;;  %485 = vmatpush.msrb.mxu0 %v461_v32  ;;  %v254_v45 = vrot.slane %v239_v39, 5  ;;  %v258_v46 = vrot.slane %v240_v41, 5  ;;  %v606_v52 = vld [vmem:[#allocation2 + $0x178] sm:$0xff]  ;;  %v458_v53 = vld [vmem:[#allocation2 + $0xd0] sm:$0xff] }
  0x26   : > { %269 = vst [vmem:[#allocation1 + $0x1] ss:$2 sm:$0xff] %v1180_v36  ;;  %534 = vmatpush.msrb.mxu1 %v510_v33  ;;  %439 = vmatpush.msra.mxu3 %v406_v31  ;;  %v508_v54 = vld [vmem:[#allocation2 + $0x108] sm:$0xff]  ;;  %v553_v55 = vld [vmem:[#allocation2 + $0x138] sm:$0xff]  ;;  %v507_v57 = vld [vmem:[#allocation2 + $0x100] sm:$0xff]  ;;  %v346_v9 = vsel %vm1210_vm6, %v843_v0, %v345_v1  ;;  %v845_v10 = vrot.slane %v1174_v34, 10  ;;  %v1226_v12 = vsel %vm1210_vm6, %v844_v3, %v349_v4 }
  0x27   : > { %580 = vmatpush.msrb.mxu2 %v555_v37  ;;  %486 = vmatpush.msrb.mxu0 %v460_v40  ;;  %v1196_v47 = vsel %vm1165_vm2, %v837_v42, %v254_v45  ;;  %v1200_v48 = vsel %vm1165_vm2, %v838_v43, %v258_v46  ;;  %v457_v56 = vld [vmem:[#allocation2 + $0xc8] sm:$0xff]  ;;  %v552_v59 = vld [vmem:[#allocation2 + $0x130] sm:$0xff]  ;;  %v456_v61 = vld [vmem:[#allocation2 + $0xc0] sm:$0xff]  ;;  %v353_v11 = vrot.slane %v239_v39, 6  ;;  %v846_v13 = vrot.slane %v1183_v38, 10  ;;  %s993_s5 = sshra.s32 %s727_s4, 4  ;;  %s994_s5 = int_to_ptr.hbm [resolvable:$true] %s993_s5 }
  0x28   : > { %440 = vmatpush.msra.mxu3 %v405_v44  ;;  %271 = vst [vmem:[#allocation1 + $0x10] ss:$2 sm:$0xff] %v1196_v47  ;;  %535 = vmatpush.msrb.mxu1 %v509_v50  ;;  %v605_v60 = vld [vmem:[#allocation2 + $0x170] sm:$0xff]  ;;  %v506_v62 = vld [vmem:[#allocation2 + $0xf8] sm:$0xff]  ;;  %v551_v63 = vld [vmem:[#allocation2 + $0x128] sm:$0xff]  ;;  %v357_v14 = vrot.slane %v240_v41, 6  ;;  %p1000_p5 = scmp.lt.s32.totalorder %s994_s5, %s1341_s3 }
  0x29   : > { %273 = vst [vmem:[#allocation1 + $0x11] ss:$2 sm:$0xff] %v1200_v48  ;;  %487 = vmatpush.msrb.mxu0 %v459_v49  ;;  %581 = vmatpush.msrb.mxu2 %v554_v51  ;;  %v604_v6 = vld [vmem:[#allocation2 + $0x168] sm:$0xff]  ;;  %v505_v7 = vld [vmem:[#allocation2 + $0xf0] sm:$0xff]  ;;  %v550_v8 = vld [vmem:[#allocation2 + $0x120] sm:$0xff]  ;;  %s995_s6 = scalar_lea.hbm %s994_s5, 16 }
  0x2a   : > { %630 = vmatpush.msrb.mxu3 %v606_v52  ;;  %536 = vmatpush.msrb.mxu1 %v508_v54  ;;  %v1240_v18 = vsel %vm1210_vm6, %v846_v13, %v357_v14  ;;  %v225_v21 = vld [vmem:[%s1151_s10 + $0x20] sm:$0x3f]  ;;  %v1251_v24 = vld [vmem:[%s1151_s10 + $0x28] sm:$0x3f]  ;;  %v655_v28 = vld [vmem:[#allocation2 + $0x1a8] sm:$0xff]  ;;  %p996_p1 = scmp.ne.s32.totalorder %s994_s5, %s995_s6  ;;  %s999_s9 = scalar_lea.hbm %s1341_s3, 32 }
  0x2b   : > { %488 = vmatpush.msrb.mxu0 %v458_v53  ;;  %582 = vmatpush.msrb.mxu2 %v553_v55  ;;  %v450_v23 = vrot.slane %v225_v21, 4  ;;  %v603_v26 = vld [vmem:[#allocation2 + $0x160] sm:$0xff]  ;;  %v602_v27 = vld [vmem:[#allocation2 + $0x158] sm:$0xff]  ;;  %v595_v29 = vrot.slane %v1251_v24, 4  ;;  %v851_v31 = vrot.slane %v225_v21, 9  ;;  %v601_v32 = vld [vmem:[#allocation2 + $0x150] sm:$0xff]  ;;  %p1001_p6 = scmp.lt.s32.totalorder %s999_s9, %s995_s6 }
  0x2c   : > { %537 = vmatpush.msrb.mxu1 %v507_v57  ;;  %631 = vmatpush.msrb.mxu3 %v605_v60  ;;  %v654_v30 = vld [vmem:[#allocation2 + $0x1a0] sm:$0xff]  ;;  %v859_v35 = vrot.slane %v1251_v24, 9  ;;  %v653_v42 = vld [vmem:[#allocation2 + $0x198] sm:$0xff]  ;;  %v652_v43 = vld [vmem:[#allocation2 + $0x190] sm:$0xff]  ;;  %p997_p2 = pnand %p996_p1, %p1128_p4 }
  0x2d   : > { %v274_v58 = vld.sshfl [vmem:[#allocation1] sm:$0xff pattern:$0x75316420]  ;;  %489 = vmatpush.msrb.mxu0 %v457_v56  ;;  %583 = vmatpush.msrb.mxu2 %v552_v59  ;;  %v598_v37 = vrot.slane %v595_v29, 5  ;;  %v502_v44 = vrot.slane %v450_v23, 6  ;;  %v651_v45 = vld [vmem:[#allocation2 + $0x188] sm:$0xff]  ;;  %p1002_p7 = por %p1001_p6, %p1000_p5 }
  0x2e   : > { %839 = vmatmul.msk.f32.vlgmr.msra.gmra.mxu0 %vm276_vm3, %v274_v58  ;;  %304 = vst [vmem:[#allocation1] ss:$2 sm:$0xff] %v1154_v16  ;;  %538 = vmatpush.msrb.mxu1 %v506_v62  ;;  %v1236_v16 = vsel %vm1210_vm6, %v845_v10, %v353_v11  ;;  %v650_v25 = vld [vmem:[#allocation2 + $0x180] sm:$0xff]  ;;  %p998_p3 = pneg %p997_p2 }
  0x2f   : > { %306 = vst [vmem:[#allocation1 + $0x1] ss:$2 sm:$0xff] %v1157_v17  ;;  %490 = vmatpush.msrb.mxu0 %v456_v61  ;;  %584 = vmatpush.msrb.mxu2 %v551_v63  ;;  %v599_v41 = vsel %vm1165_vm2, %v859_v35, %v598_v37 }
  0x30   : > { %v275_v5 = vld.sshfl [vmem:[#allocation1 + $0x10] sm:$0xff pattern:$0x75316420]  ;;  %632 = vmatpush.msrb.mxu3 %v604_v6  ;;  %539 = vmatpush.msrb.mxu1 %v505_v7  ;;  %p1003_p9 = pnand %p1002_p7, %p998_p3 }
  0x31   : > { %308 = vst [vmem:[#allocation1 + $0x10] ss:$2 sm:$0xff] %v1174_v34  ;;  %585 = vmatpush.msrb.mxu2 %v550_v8  ;;  %679 = vmatpush.msra.mxu0 %v655_v28 }
  0x32   : > { %310 = vst [vmem:[#allocation1 + $0x11] ss:$2 sm:$0xff] %v1183_v38  ;;  %633 = vmatpush.msrb.mxu3 %v603_v26 }
  0x33   : > { %680 = vmatpush.msra.mxu0 %v654_v30 }
  0x34   : > { %634 = vmatpush.msrb.mxu3 %v602_v27 }
  0x35   : > { %681 = vmatpush.msra.mxu0 %v653_v42 }
  0x36   : > { %v311_v15 = vld.sshfl [vmem:[#allocation1] sm:$0xff pattern:$0x75316420]  ;;  %840 = vmatmul.msk.f32.gmra.mxu0 %vm276_vm3, %v275_v5  ;;  %635 = vmatpush.msrb.mxu3 %v601_v32 }
  0x37   : > { %841 = vmatmul.msk.f32.vlgmr.msra.gmra.mxu1 %vm276_vm3, %v311_v15  ;;  %366 = vst [vmem:[#allocation1] ss:$2 sm:$0xff] %v346_v9  ;;  %682 = vmatpush.msra.mxu0 %v652_v43 }
  0x38   : > { %368 = vst [vmem:[#allocation1 + $0x1] ss:$2 sm:$0xff] %v1226_v12  ;;  %871 = vmatpush.msra.mxu1 %v655_v28 }
  0x39   : > { %v312_v19 = vld.sshfl [vmem:[#allocation1 + $0x10] sm:$0xff pattern:$0x75316420]  ;;  %683 = vmatpush.msra.mxu0 %v651_v45 }
  0x3a   : > { %370 = vst [vmem:[#allocation1 + $0x10] ss:$2 sm:$0xff] %v1236_v16  ;;  %872 = vmatpush.msra.mxu1 %v654_v30 }
  0x3b   : > { %372 = vst [vmem:[#allocation1 + $0x11] ss:$2 sm:$0xff] %v1240_v18  ;;  %684 = vmatpush.msra.mxu0 %v650_v25 }
  0x3c   : > { %873 = vmatpush.msra.mxu1 %v653_v42 }
  0x3e   : > { %874 = vmatpush.msra.mxu1 %v652_v43 }
  0x3f   : > { %v373_v20 = vld.sshfl [vmem:[#allocation1] sm:$0xff pattern:$0x75316420]  ;;  %842 = vmatmul.msk.f32.gmra.mxu1 %vm276_vm3, %v312_v19 }
  0x40   : > { %847 = vmatmul.msk.f32.vlgmr.msra.gmra.mxu2 %vm276_vm3, %v373_v20  ;;  %412 = vst [vmem:[#allocation1] ss:$2 sm:$0xff] %v1157_v17  ;;  %v453_v17 = vrot.slane %v450_v23, 5  ;;  %875 = vmatpush.msra.mxu1 %v651_v45  ;;  %v948_v20 = vld [vmem:[%s1340_s2] ss:$0 sm:$0xff] }
  0x41   : > { %414 = vst [vmem:[#allocation1 + $0x1] ss:$2 sm:$0xff] %v1174_v34 }
  0x42   : > { %v374_v22 = vld.sshfl [vmem:[#allocation1 + $0x10] sm:$0xff pattern:$0x75316420]  ;;  %v454_v39 = vsel %vm1165_vm2, %v851_v31, %v453_v17  ;;  %876 = vmatpush.msra.mxu1 %v650_v25 }
  0x43   : > { %416 = vst [vmem:[#allocation1 + $0x10] ss:$2 sm:$0xff] %v1183_v38 }
  0x44   : > { %418 = vst [vmem:[#allocation1 + $0x11] ss:$2 sm:$0xff] %v225_v21 }
  0x48   : > { %v419_v33 = vld.sshfl [vmem:[#allocation1] sm:$0xff pattern:$0x75316420]  ;;  %848 = vmatmul.msk.f32.gmra.mxu2 %vm276_vm3, %v374_v22 }
  0x49   : > { %849 = vmatmul.msk.f32.vlgmr.msra.gmra.mxu3 %vm276_vm3, %v419_v33  ;;  %462 = vst [vmem:[#allocation1] ss:$2 sm:$0xff] %v1180_v36  ;;  %v854_v36 = vrot.slane %v225_v21, 10 }
  0x4a   : > { %464 = vst [vmem:[#allocation1 + $0x1] ss:$2 sm:$0xff] %v1196_v47 }
  0x4b   : > { %v420_v40 = vld.sshfl [vmem:[#allocation1 + $0x10] sm:$0xff pattern:$0x75316420]  ;;  %v503_v49 = vsel %vm1210_vm6, %v854_v36, %v502_v44 }
  0x4c   : > { %466 = vst [vmem:[#allocation1 + $0x10] ss:$2 sm:$0xff] %v1200_v48 }
  0x4d   : > { %468 = vst [vmem:[#allocation1 + $0x11] ss:$2 sm:$0xff] %v454_v39 }
  0x51   : > { %850 = vmatmul.msk.f32.gmra.mxu3 %vm276_vm3, %v420_v40  ;;  %v469_v46 = vld.sshfl [vmem:[#allocation1] sm:$0xff pattern:$0x75316420] }
  0x52   : > { %852 = vmatmul.msk.f32.vlgmr.msrb.gmra.mxu0 %vm276_vm3, %v469_v46  ;;  %511 = vst [vmem:[#allocation1] ss:$2 sm:$0xff] %v1226_v12 }
  0x53   : > { %513 = vst [vmem:[#allocation1 + $0x1] ss:$2 sm:$0xff] %v1236_v16 }
  0x54   : > { %v470_v50 = vld.sshfl [vmem:[#allocation1 + $0x10] sm:$0xff pattern:$0x75316420] }
  0x55   : > { %515 = vst [vmem:[#allocation1 + $0x10] ss:$2 sm:$0xff] %v1240_v18 }
  0x56   : > { %517 = vst [vmem:[#allocation1 + $0x11] ss:$2 sm:$0xff] %v503_v49 }
  0x5a   : > { %v518_v51 = vld.sshfl [vmem:[#allocation1] sm:$0xff pattern:$0x75316420]  ;;  %853 = vmatmul.msk.f32.gmra.mxu0 %vm276_vm3, %v470_v50 }
  0x5b   : > { %855 = vmatmul.msk.f32.vlgmr.msrb.gmra.mxu1 %vm276_vm3, %v518_v51  ;;  %557 = vst [vmem:[#allocation1] ss:$2 sm:$0xff] %v1174_v34  ;;  %v862_v34 = vrot.slane %v1251_v24, 10 }
  0x5c   : > { %559 = vst [vmem:[#allocation1 + $0x1] ss:$2 sm:$0xff] %v1183_v38  ;;  %v647_v38 = vrot.slane %v595_v29, 6 }
  0x5d   : > { %v519_v52 = vld.sshfl [vmem:[#allocation1 + $0x10] sm:$0xff pattern:$0x75316420] }
  0x5e   : > { %561 = vst [vmem:[#allocation1 + $0x10] ss:$2 sm:$0xff] %v225_v21 }
  0x5f   : > { %563 = vst [vmem:[#allocation1 + $0x11] ss:$2 sm:$0xff] %v1251_v24 }
  0x63   : > { %v564_v53 = vld.sshfl [vmem:[#allocation1] sm:$0xff pattern:$0x75316420]  ;;  %856 = vmatmul.msk.f32.gmra.mxu1 %vm276_vm3, %v519_v52 }
  0x64   : > { %857 = vmatmul.msk.f32.vlgmr.msrb.gmra.mxu2 %vm276_vm3, %v564_v53  ;;  %607 = vst [vmem:[#allocation1] ss:$2 sm:$0xff] %v1196_v47  ;;  %v648_v47 = vsel %vm1210_vm6, %v862_v34, %v647_v38 }
  0x65   : > { %609 = vst [vmem:[#allocation1 + $0x1] ss:$2 sm:$0xff] %v1200_v48 }
  0x66   : > { %v565_v54 = vld.sshfl [vmem:[#allocation1 + $0x10] sm:$0xff pattern:$0x75316420] }
  0x67   : > { %611 = vst [vmem:[#allocation1 + $0x10] ss:$2 sm:$0xff] %v454_v39 }
  0x68   : > { %613 = vst [vmem:[#allocation1 + $0x11] ss:$2 sm:$0xff] %v599_v41 }
  0x6c   : > { %858 = vmatmul.msk.f32.gmra.mxu2 %vm276_vm3, %v565_v54  ;;  %v614_v55 = vld.sshfl [vmem:[#allocation1] sm:$0xff pattern:$0x75316420] }
  0x6d   : > { %860 = vmatmul.msk.f32.vlgmr.msrb.gmra.mxu3 %vm276_vm3, %v614_v55  ;;  %656 = vst [vmem:[#allocation1] ss:$2 sm:$0xff] %v1236_v16 }
  0x6e   : > { %658 = vst [vmem:[#allocation1 + $0x1] ss:$2 sm:$0xff] %v1240_v18 }
  0x6f   : > { %v615_v48 = vld.sshfl [vmem:[#allocation1 + $0x10] sm:$0xff pattern:$0x75316420] }
  0x70   : > { %660 = vst [vmem:[#allocation1 + $0x10] ss:$2 sm:$0xff] %v503_v49 }
  0x71   : > { %662 = vst [vmem:[#allocation1 + $0x11] ss:$2 sm:$0xff] %v648_v47 }
  0x75   : > { %861 = vmatmul.msk.f32.gmra.mxu3 %vm276_vm3, %v615_v48  ;;  %v663_v56 = vld.sshfl [vmem:[#allocation1] sm:$0xff pattern:$0x75316420] }
  0x76   : > { %863 = vmatmul.msk.f32.vlgmr.msra.gmra.mxu0 %vm276_vm3, %v663_v56 }
  0x78   : > { %v664_v57 = vld.sshfl [vmem:[#allocation1 + $0x10] sm:$0xff pattern:$0x75316420] }
  0x79   : > { %864 = vmatmul.msk.f32.vlgmr.msra.gmra.mxu1 %vm276_vm3, %v664_v57 }
  0xab   : > { %v298_v58 = vpop.f32.mrf.mxu0 }
  0xb3   : > { %v301_v61 = vpop.f32.mrf.mxu0 }
  0xb4   : > { %v334_v59 = vpop.f32.mrf.mxu1 }
  0xb5   : > { %v335_v63 = vadd.f32 %v334_v59, %v298_v58 }
  0xbc   : > { %v337_v62 = vpop.f32.mrf.mxu1 }
  0xbd   : > { %v338_v4 = vadd.f32 %v337_v62, %v301_v61 }
  0xc3   : > { %v396_v60 = vpop.f32.mrf.mxu2 }
  0xc4   : > { %v402_v2 = vadd.f32 %v396_v60, %v335_v63 }
  0xcb   : > { %v399_v1 = vpop.f32.mrf.mxu2 }
  0xcc   : > { %v442_v0 = vpop.f32.mrf.mxu3  ;;  %v403_v8 = vadd.f32 %v399_v1, %v338_v4 }
  0xcd   : > { %v448_v5 = vadd.f32 %v442_v0, %v402_v2 }
  0xcf   : > { %v492_v3 = vpop.f32.mrf.mxu0 }
  0xd0   : > { %v498_v9 = vadd.f32 %v492_v3, %v448_v5 }
  0xd4   : > { %v445_v7 = vpop.f32.mrf.mxu3 }
  0xd5   : > { %v449_v13 = vadd.f32 %v445_v7, %v403_v8 }
  0xd7   : > { %v495_v11 = vpop.f32.mrf.mxu0 }
  0xd8   : > { %v541_v6 = vpop.f32.mrf.mxu1  ;;  %v499_v18 = vadd.f32 %v495_v11, %v449_v13 }
  0xd9   : > { %v547_v12 = vadd.f32 %v541_v6, %v498_v9 }
  0xe0   : > { %v544_v15 = vpop.f32.mrf.mxu1 }
  0xe1   : > { %v548_v24 = vadd.f32 %v544_v15, %v499_v18 }
  0xe7   : > { %v587_v10 = vpop.f32.mrf.mxu2 }
  0xe8   : > { %v593_v14 = vadd.f32 %v587_v10, %v547_v12 }
  0xef   : > { %v590_v22 = vpop.f32.mrf.mxu2 }
  0xf0   : > { %v637_v16 = vpop.f32.mrf.mxu3  ;;  %v594_v27 = vadd.f32 %v590_v22, %v548_v24 }
  0xf1   : > { %v643_v19 = vadd.f32 %v637_v16, %v593_v14 }
  0xf3   : > { %v686_v21 = vpop.f32.mrf.mxu0 }
  0xf4   : > { %v692_v23 = vadd.f32 %v686_v21, %v643_v19 }
  0xf6   : > { %v698_v26 = vadd.f32 %v948_v20, %v692_v23  ;;  %v689_v30 = vpop.f32.mrf.mxu1 }
  0xf8   : > { %v702_v28 = vrot.slane %v698_v26, 4  ;;  %706 = vst [vmem:[%s212_s26] sm:$0xf] %v698_v26  ;;  %v640_v29 = vpop.f32.mrf.mxu3 }
  0xf9   : > { %v644_v31 = vadd.f32 %v640_v29, %v594_v27 }
  0xfa   : > { %707 = vst [vmem:[%s212_s26 + $0x4] sm:$0xf] %v702_v28 }
  0xfb   : > { %v693_v17 = vadd.f32 %v689_v30, %v644_v31 }
  0xfd   : > { %v699_v32 = vadd.f32 %v948_v20, %v693_v17 }
  0xff   : > { %v703_v33 = vrot.slane %v699_v32, 4  ;;  %708 = vst [vmem:[%s212_s26 + $0x8] sm:$0xf] %v699_v32 }
 0x101   : > { %709 = vst [vmem:[%s212_s26 + $0xc] sm:$0xf] %v703_v33 }
 0x102   : > { %1006 = shalt.err (!%p1003_p9)
}
 0x103   : > { %s1066_s11 = smov 64   ;;  %s1067_s19 = smov 4  }
 0x104   : > { %882 = dma.vmem_to_hbm [thread:$0]  (%p1128_p4), %s725_s30, 256, %s727_s4, %s711_s15, %s1066_s11, %s1066_s11, %s1067_s19  }
 0x105 PF: > { %p894_p10 = scmp.ge.s32.totalorder %s1061_s17, 2  ;;  %s741_s21 = sand.u32 1, %s1041_s12  }
 0x106   : > { %s742_s23 = scalar_lea.sflag [#allocation4], %s741_s21 }
 0x107   : > { %p889_p11 = pnand %p894_p10, %p1135_p8 }
 0x109   : > { %p890_p12 = pneg %p889_p11 }
 0x10b   : > { %1036 = dma.done.wait (%p890_p12), %s742_s23, 256  }
 0x10c   : > { %1038 = vsyncadd (%p890_p12), %s742_s23, 4294967040  ;;  %s17_s17 = sadd.s32 1, %s1061_s17   ;;  %s1348_s12 = smov %s1045_s13 }
 0x10d   : > { %p14_p13 = scmp.ge.s32.totalorder %s17_s17, 4   ;;  %s1349_s13 = smov %s1049_s14 }
 0x10e   : > { %s1350_s14 = smov %s1141_s25  ;;  %s1351_s15 = smov %s1057_s16 }
 0x10f   : > { %s1352_s16 = smov %s1354_s20  ;;  %16 = sbr.rel (!%p14_p13) target bundleno = 5 (0x5), region = 111 }
 0x114   :  { %748 = vsyncpa [#allocation3], 1 }
 0x115   :  { %750 = vsyncpa [#allocation3 + $0x1], 1 }
 0x116   :  { %751 = vsyncpa [#allocation4], 1 }
 0x117   :  { %753 = vsyncpa [#allocation4 + $0x1], 1 }

</bundles_post_ra>
